<compile_context>
chip_gen: v5e
topology: v5e:2x2
jax: 0.10.0
libtpu: 0.0.40
codegen_flags: <defaults>
</compile_context>

<pallas_src>
import math
from functools import partial

import jax
import jax.numpy as jnp
from jax.experimental import pallas as pl
from jax.experimental.pallas import tpu as pltpu

# ---------------- configuration (small shapes consistent with the module) ----------------
VOCAB = 64
MANA_VOCAB = 16
LATENT = 32      # must equal EMBED: memory = latent.unsqueeze(1) feeds cross-attn with d_model=EMBED
EMBED = 32
HEADS = 4
HIDDEN = 64
LAYERS = 2
MAX_LEN = 16
SEQ = 8
BATCH = 2
OUT_PAD = 128    # lane-dense padded width for the vocab projection (sliced back to VOCAB)

F32 = jnp.float32
_LN_EPS = 1e-5
_SQRT2 = math.sqrt(2.0)

_STREAMS = (
    ("name", "name_tokens"),
    ("mana", "mana_tokens"),
    ("type", "type_line_tokens"),
    ("oracle", "oracle_tokens"),
    ("flavor", "flavor_text_tokens"),
)


# ======================================================================================
# Fused per-stream decoder kernel (embedding -> 2 decoder layers -> vocab projection)
# ======================================================================================
def _stream_decoder_kernel(batch, seq,
                           tok_ref, emb_ref, pe_ref, mem_ref,
                           wqkv_ref, bqkv_ref, wo_sa_ref, bo_sa_ref,
                           wv_ca_ref, bv_ca_ref, wo_ca_ref, bo_ca_ref,
                           lng_ref, lnb_ref,
                           w1_ref, b1_ref, w2_ref, b2_ref,
                           wout_ref, bout_ref,
                           out_ref):
    R = batch * seq
    E = emb_ref.shape[1]
    V = emb_ref.shape[0]
    dh = E // HEADS
    scale = 1.0 / math.sqrt(dh)

    # ---- embedding lookup as a one-hot MXU matmul (exact), plus positional encoding ----
    tok = tok_ref[0]                                                 # (R, 1) int32
    vocab_ids = jax.lax.broadcasted_iota(jnp.int32, (R, V), 1)
    onehot = (vocab_ids == tok).astype(F32)
    x = jnp.dot(onehot, emb_ref[...], preferred_element_type=F32) + pe_ref[...]

    # ---- block-diagonal causal mask over the fused (B*S) slab (hoisted, finite negative) ----
    rows = jax.lax.broadcasted_iota(jnp.int32, (R, R), 0)
    cols = jax.lax.broadcasted_iota(jnp.int32, (R, R), 1)
    allowed = jnp.logical_and((rows // seq) == (cols // seq), cols <= rows)
    mask = jnp.where(allowed, 0.0, -1e30).astype(F32)

    def layer_norm(v, idx):
        g = lng_ref[0, idx]                                          # (1, E)
        b = lnb_ref[0, idx]
        mu = jnp.mean(v, axis=-1, keepdims=True)
        vc = v - mu
        var = jnp.mean(vc * vc, axis=-1, keepdims=True)
        return vc * jax.lax.rsqrt(var + _LN_EPS) * g + b

    mem = mem_ref[...]                                               # (R, E) latent repeated per row

    for l in range(LAYERS):
        # ---- masked multi-head self-attention (fused QKV projection, post-norm) ----
        qkv = jnp.dot(x, wqkv_ref[0, l], preferred_element_type=F32) + bqkv_ref[0, l]
        wo = wo_sa_ref[0, l]
        sa = jnp.zeros((R, E), F32)
        for h in range(HEADS):
            q = qkv[:, h * dh:(h + 1) * dh]
            k = qkv[:, E + h * dh:E + (h + 1) * dh]
            v = qkv[:, 2 * E + h * dh:2 * E + (h + 1) * dh]
            s = jnp.dot(q, k.T, preferred_element_type=F32) * scale + mask
            s = s - jnp.max(s, axis=-1, keepdims=True)
            p = jnp.exp(s)
            p = p * pl.reciprocal(jnp.sum(p, axis=-1, keepdims=True), approx=True)
            oh = jnp.dot(p, v, preferred_element_type=F32)
            # fold the per-head slice of the output projection in, avoiding a concat
            sa = sa + jnp.dot(oh, wo[h * dh:(h + 1) * dh, :], preferred_element_type=F32)
        sa = sa + bo_sa_ref[0, l]
        x = layer_norm(x + sa, 3 * l + 0)

        # ---- cross-attention: Skv == 1 so softmax == 1 exactly -> (mem @ Wv + bv) @ Wo + bo ----
        ca = jnp.dot(jnp.dot(mem, wv_ca_ref[0, l], preferred_element_type=F32) + bv_ca_ref[0, l],
                     wo_ca_ref[0, l], preferred_element_type=F32) + bo_ca_ref[0, l]
        x = layer_norm(x + ca, 3 * l + 1)

        # ---- FFN (relu; dropout = identity in eval) ----
        hid = jnp.maximum(jnp.dot(x, w1_ref[0, l], preferred_element_type=F32) + b1_ref[0, l], 0.0)
        ff = jnp.dot(hid, w2_ref[0, l], preferred_element_type=F32) + b2_ref[0, l]
        x = layer_norm(x + ff, 3 * l + 2)

    # ---- lane-dense (128-wide, zero-padded) vocab projection ----
    out_ref[0] = jnp.dot(x, wout_ref[0], preferred_element_type=F32) + bout_ref[0]


# ======================================================================================
# Fused SmallAttributesDecoder kernel (stem + power/toughness/loyalty heads + has_pt)
# ======================================================================================
def _small_attrs_kernel(latent_ref,
                        sfg_ref, sfb_ref, sfw_ref, sfbw_ref,
                        hptw_ref, hptb_ref,
                        hg_ref, hb_ref, hw1_ref, hb1_ref,
                        pw2_ref, pb2_ref, tw2_ref, tb2_ref, lw2_ref, lb2_ref,
                        power_ref, tough_ref, loyal_ref, haspt_ref, hasloy_ref):
    def ln(v, g, b):
        mu = jnp.mean(v, axis=-1, keepdims=True)
        vc = v - mu
        var = jnp.mean(vc * vc, axis=-1, keepdims=True)
        return vc * jax.lax.rsqrt(var + _LN_EPS) * g + b

    def gelu(v):  # exact (erf) GELU, matching nn.GELU() default
        return 0.5 * v * (1.0 + jax.lax.erf(v / _SQRT2))

    lat = latent_ref[...]
    feats = gelu(jnp.dot(ln(lat, sfg_ref[...], sfb_ref[...]), sfw_ref[...],
                         preferred_element_type=F32) + sfbw_ref[...])

    hp = jax.nn.sigmoid(jnp.dot(feats, hptw_ref[...], preferred_element_type=F32) + hptb_ref[...])
    haspt_ref[...] = hp
    hasloy_ref[...] = hp   # reproduces the reference bug: has_loyalty also uses the has_pt head

    outs = (power_ref, tough_ref, loyal_ref)
    w2s = ((pw2_ref, pb2_ref), (tw2_ref, tb2_ref), (lw2_ref, lb2_ref))
    for i in range(3):
        h = gelu(jnp.dot(ln(feats, hg_ref[i], hb_ref[i]), hw1_ref[i],
                         preferred_element_type=F32) + hb1_ref[i])
        outs[i][...] = jnp.dot(h, w2s[i][0][...], preferred_element_type=F32) + w2s[i][1][...]


# ======================================================================================
# Forward pass wrapper (2 pallas_calls total)
# ======================================================================================
def attribute_decomposed_decoder_forward(params, latent, target_seq):
    B = latent.shape[0]
    S = target_seq[_STREAMS[0][1]].shape[1]
    R = B * S
    NS = len(_STREAMS)

    # ---- small attributes (single fused call) ----
    sp = params["small"]
    power, tough, loyal, has_pt, has_loyalty = pl.pallas_call(
        _small_attrs_kernel,
        out_shape=(jax.ShapeDtypeStruct((B, 25), F32),
                   jax.ShapeDtypeStruct((B, 25), F32),
                   jax.ShapeDtypeStruct((B, 13), F32),
                   jax.ShapeDtypeStruct((B, 1), F32),
                   jax.ShapeDtypeStruct((B, 1), F32)),
    )(latent, sp["sf_g"], sp["sf_b"], sp["sf_w"], sp["sf_bias"],
      sp["hpt_w"], sp["hpt_b"],
      sp["head_ln_g"], sp["head_ln_b"], sp["head_w1"], sp["head_b1"],
      sp["p_w2"], sp["p_b2"], sp["t_w2"], sp["t_b2"], sp["l_w2"], sp["l_b2"])

    # ---- fused per-stream decoders: grid over the 5 independent streams ----
    tokens_all = jnp.stack([target_seq[k] for _, k in _STREAMS]).astype(jnp.int32).reshape(NS, R, 1)
    pe_rows = jnp.tile(params["pe"][:S], (B, 1))          # (R, E): pos enc per fused row
    mem_rows = jnp.repeat(latent, S, axis=0)              # (R, E): latent.unsqueeze(1) broadcast over S
    st = params["streams"]

    def stream_spec(a):
        nd = a.ndim
        return pl.BlockSpec((1,) + a.shape[1:], lambda s, _n=nd: (s,) + (0,) * (_n - 1))

    def shared_spec(a):
        nd = a.ndim
        return pl.BlockSpec(a.shape, lambda s, _n=nd: (0,) * _n)

    w_order = ["wqkv", "bqkv", "wo_sa", "bo_sa", "wv_ca", "bv_ca", "wo_ca", "bo_ca",
               "ln_g", "ln_b", "w1", "b1", "w2", "b2", "wout", "bout"]
    w_args = [st[k] for k in w_order]

    logits_all = pl.pallas_call(
        partial(_stream_decoder_kernel, B, S),
        grid=(NS,),
        in_specs=[stream_spec(tokens_all),
                  shared_spec(params["embedding"]),
                  shared_spec(pe_rows),
                  shared_spec(mem_rows)] + [stream_spec(a) for a in w_args],
        out_specs=pl.BlockSpec((1, R, OUT_PAD), lambda s: (s, 0, 0)),
        out_shape=jax.ShapeDtypeStruct((NS, R, OUT_PAD), F32),
        compiler_params=pltpu.CompilerParams(dimension_semantics=("parallel",)),
    )(tokens_all, params["embedding"], pe_rows, mem_rows, *w_args)

    results = {}
    for i, (name, _) in enumerate(_STREAMS):
        results[name + "_logits"] = logits_all[i, :, :VOCAB].reshape(B, S, VOCAB)
    results.update({
        "power_logits": power,
        "toughness_logits": tough,
        "loyalty_logits": loyal,
        "has_pt": has_pt,
        "has_loyalty": has_loyalty,
    })
    return results


# ======================================================================================
# Deterministic parameter construction (stream/layer weights pre-stacked for the kernel)
# ======================================================================================
def _dense(key, fan_in, fan_out):
    kw, kb = jax.random.split(key)
    lim = 1.0 / math.sqrt(fan_in)
    w = jax.random.uniform(kw, (fan_in, fan_out), F32, -lim, lim)
    b = jax.random.uniform(kb, (1, fan_out), F32, -lim, lim)
    return w, b


def _ln_params(dim):
    return jnp.ones((1, dim), F32), jnp.zeros((1, dim), F32)


def init_params(key):
    keys = iter(jax.random.split(key, 1024))
    nk = lambda: next(keys)

    params = {}
    params["embedding"] = jax.random.normal(nk(), (VOCAB, EMBED), F32)
    params["mana_embedding"] = jax.random.normal(nk(), (MANA_VOCAB, EMBED), F32)  # unused by forward (as in module)

    # positional encoding buffer (max_len + 2 rows, matching PositionalEncoding(embed_dim, max_len + 2))
    pos = jnp.arange(MAX_LEN + 2, dtype=F32)[:, None]
    div = jnp.exp(jnp.arange(0, EMBED, 2, dtype=F32) * (-math.log(10000.0) / EMBED))
    pe = jnp.zeros((MAX_LEN + 2, EMBED), F32)
    pe = pe.at[:, 0::2].set(jnp.sin(pos * div))
    pe = pe.at[:, 1::2].set(jnp.cos(pos * div))
    params["pe"] = pe

    # ---- SmallAttributesDecoder params (heads stacked where shapes match) ----
    small = {}
    small["sf_g"], small["sf_b"] = _ln_params(LATENT)
    small["sf_w"], small["sf_bias"] = _dense(nk(), LATENT, EMBED)
    small["hpt_w"], small["hpt_b"] = _dense(nk(), EMBED, 1)
    _ = _dense(nk(), EMBED, 1)  # has_loyalty head: allocated in the module, unused by forward (reference bug)
    hg, hb, hw1, hb1 = [], [], [], []
    for odim, pre in ((25, "p"), (25, "t"), (13, "l")):
        g, b = _ln_params(EMBED)
        hg.append(g); hb.append(b)
        w1, b1 = _dense(nk(), EMBED, 128)
        hw1.append(w1); hb1.append(b1)
        w2, b2 = _dense(nk(), 128, odim)
        small[pre + "_w2"] = w2
        small[pre + "_b2"] = b2
    small["head_ln_g"] = jnp.stack(hg)    # (3, 1, EMBED)
    small["head_ln_b"] = jnp.stack(hb)
    small["head_w1"] = jnp.stack(hw1)     # (3, EMBED, 128)
    small["head_b1"] = jnp.stack(hb1)     # (3, 1, 128)
    params["small"] = small

    # ---- per-stream TransformerDecoder stacks, pre-stacked as (NS, LAYERS, ...) ----
    def stream_params():
        acc = {k: [] for k in ("wqkv", "bqkv", "wo_sa", "bo_sa",
                               "wv_ca", "bv_ca", "wo_ca", "bo_ca",
                               "ln_g", "ln_b", "w1", "b1", "w2", "b2")}
        for _l in range(LAYERS):
            wq, bq = _dense(nk(), EMBED, EMBED)
            wk, bk = _dense(nk(), EMBED, EMBED)
            wv, bv = _dense(nk(), EMBED, EMBED)
            wo, bo = _dense(nk(), EMBED, EMBED)
            acc["wqkv"].append(jnp.concatenate([wq, wk, wv], axis=1))   # fused QKV projection
            acc["bqkv"].append(jnp.concatenate([bq, bk, bv], axis=1))
            acc["wo_sa"].append(wo); acc["bo_sa"].append(bo)
            # cross-attention q/k projections are algebraically dead (Skv == 1 -> softmax == 1)
            _ = _dense(nk(), EMBED, EMBED)
            _ = _dense(nk(), EMBED, EMBED)
            wvc, bvc = _dense(nk(), EMBED, EMBED)
            woc, boc = _dense(nk(), EMBED, EMBED)
            acc["wv_ca"].append(wvc); acc["bv_ca"].append(bvc)
            acc["wo_ca"].append(woc); acc["bo_ca"].append(boc)
            g1, bb1 = _ln_params(EMBED); g2, bb2 = _ln_params(EMBED); g3, bb3 = _ln_params(EMBED)
            acc["ln_g"].append(jnp.stack([g1, g2, g3]))                 # (3, 1, EMBED)
            acc["ln_b"].append(jnp.stack([bb1, bb2, bb3]))
            w1f, b1f = _dense(nk(), EMBED, HIDDEN)
            w2f, b2f = _dense(nk(), HIDDEN, EMBED)
            acc["w1"].append(w1f); acc["b1"].append(b1f)
            acc["w2"].append(w2f); acc["b2"].append(b2f)
        out = {k: jnp.stack(v) for k, v in acc.items()}
        out["ln_g"] = out["ln_g"].reshape(LAYERS * 3, 1, EMBED)
        out["ln_b"] = out["ln_b"].reshape(LAYERS * 3, 1, EMBED)
        wout, bout = _dense(nk(), EMBED, VOCAB)
        out["wout"] = jnp.pad(wout, ((0, 0), (0, OUT_PAD - VOCAB)))     # lane-dense padded output head
        out["bout"] = jnp.pad(bout, ((0, 0), (0, OUT_PAD - VOCAB)))
        return out

    per_stream = [stream_params() for _ in _STREAMS]
    params["streams"] = {k: jnp.stack([s[k] for s in per_stream]) for k in per_stream[0]}
    return params


# ======================================================================================
if __name__ == "__main__":
    root = jax.random.PRNGKey(0)
    pkey, lkey, tkey = jax.random.split(root, 3)

    params = init_params(pkey)
    latent = jax.random.normal(lkey, (BATCH, LATENT), F32)

    tok_names = [k for _, k in _STREAMS]
    tok_keys = jax.random.split(tkey, len(tok_names))
    target_seq = {n: jax.random.randint(k, (BATCH, SEQ), 0, VOCAB, dtype=jnp.int32)
                  for n, k in zip(tok_names, tok_keys)}

    out = attribute_decomposed_decoder_forward(params, latent, target_seq)
    out = jax.block_until_ready(out)

    # light sanity on shapes
    assert out["name_logits"].shape == (BATCH, SEQ, VOCAB)
    assert out["flavor_logits"].shape == (BATCH, SEQ, VOCAB)
    assert out["power_logits"].shape == (BATCH, 25)
    assert out["loyalty_logits"].shape == (BATCH, 13)
    assert out["has_pt"].shape == (BATCH, 1)
    assert out["has_loyalty"].shape == (BATCH, 1)

    print("KERNEL_OK")
</pallas_src>

<mosaic_0001>
module attributes {stable_mosaic.version = 11 : i64} {
  func.func @_small_attrs_kernel(%arg0: memref<2x32xf32, #tpu.memory_space<vmem>>, %arg1: memref<1x32xf32, #tpu.memory_space<vmem>>, %arg2: memref<1x32xf32, #tpu.memory_space<vmem>>, %arg3: memref<32x32xf32, #tpu.memory_space<vmem>>, %arg4: memref<1x32xf32, #tpu.memory_space<vmem>>, %arg5: memref<32x1xf32, #tpu.memory_space<vmem>>, %arg6: memref<1x1xf32, #tpu.memory_space<vmem>>, %arg7: memref<3x1x32xf32, #tpu.memory_space<vmem>>, %arg8: memref<3x1x32xf32, #tpu.memory_space<vmem>>, %arg9: memref<3x32x128xf32, #tpu.memory_space<vmem>>, %arg10: memref<3x1x128xf32, #tpu.memory_space<vmem>>, %arg11: memref<128x25xf32, #tpu.memory_space<vmem>>, %arg12: memref<1x25xf32, #tpu.memory_space<vmem>>, %arg13: memref<128x25xf32, #tpu.memory_space<vmem>>, %arg14: memref<1x25xf32, #tpu.memory_space<vmem>>, %arg15: memref<128x13xf32, #tpu.memory_space<vmem>>, %arg16: memref<1x13xf32, #tpu.memory_space<vmem>>, %arg17: memref<2x25xf32, #tpu.memory_space<vmem>>, %arg18: memref<2x25xf32, #tpu.memory_space<vmem>>, %arg19: memref<2x13xf32, #tpu.memory_space<vmem>>, %arg20: memref<2x1xf32, #tpu.memory_space<vmem>>, %arg21: memref<2x1xf32, #tpu.memory_space<vmem>>) attributes {dimension_semantics = [], scalar_prefetch = 0 : i64, scratch_operands = 0 : i64, tpu.core_type = #tpu.core_type<tc>} {
    %c0 = arith.constant 0 : index
    %c0_0 = arith.constant 0 : index
    %0 = vector.load %arg0[%c0, %c0_0] : memref<2x32xf32, #tpu.memory_space<vmem>>, vector<2x32xf32>
    %c0_1 = arith.constant 0 : index
    %c0_2 = arith.constant 0 : index
    %1 = vector.load %arg1[%c0_1, %c0_2] : memref<1x32xf32, #tpu.memory_space<vmem>>, vector<1x32xf32>
    %c0_3 = arith.constant 0 : index
    %c0_4 = arith.constant 0 : index
    %2 = vector.load %arg2[%c0_3, %c0_4] : memref<1x32xf32, #tpu.memory_space<vmem>>, vector<1x32xf32>
    %cst = arith.constant dense<0.000000e+00> : vector<2xf32>
    %3 = vector.multi_reduction <add>, %0, %cst [1] : vector<2x32xf32> to vector<2xf32>
    %4 = vector.shape_cast %3 : vector<2xf32> to vector<2x1xf32>
    %cst_5 = arith.constant 3.200000e+01 : f32
    %5 = vector.broadcast %cst_5 : f32 to vector<2x1xf32>
    %6 = arith.divf %4, %5 : vector<2x1xf32>
    %7 = vector.broadcast %6 : vector<2x1xf32> to vector<2x32xf32>
    %8 = arith.subf %0, %7 : vector<2x32xf32>
    %9 = arith.mulf %8, %8 : vector<2x32xf32>
    %cst_6 = arith.constant dense<0.000000e+00> : vector<2xf32>
    %10 = vector.multi_reduction <add>, %9, %cst_6 [1] : vector<2x32xf32> to vector<2xf32>
    %11 = vector.shape_cast %10 : vector<2xf32> to vector<2x1xf32>
    %cst_7 = arith.constant 3.200000e+01 : f32
    %12 = vector.broadcast %cst_7 : f32 to vector<2x1xf32>
    %13 = arith.divf %11, %12 : vector<2x1xf32>
    %cst_8 = arith.constant 9.99999974E-6 : f32
    %14 = vector.broadcast %cst_8 : f32 to vector<2x1xf32>
    %15 = arith.addf %13, %14 : vector<2x1xf32>
    %16 = math.rsqrt %15 : vector<2x1xf32>
    %17 = vector.broadcast %16 : vector<2x1xf32> to vector<2x32xf32>
    %18 = arith.mulf %8, %17 : vector<2x32xf32>
    %19 = vector.broadcast %1 : vector<1x32xf32> to vector<2x32xf32>
    %20 = arith.mulf %18, %19 : vector<2x32xf32>
    %21 = vector.broadcast %2 : vector<1x32xf32> to vector<2x32xf32>
    %22 = arith.addf %20, %21 : vector<2x32xf32>
    %c0_9 = arith.constant 0 : index
    %c0_10 = arith.constant 0 : index
    %23 = vector.load %arg3[%c0_9, %c0_10] : memref<32x32xf32, #tpu.memory_space<vmem>>, vector<32x32xf32>
    %cst_11 = arith.constant dense<0.000000e+00> : vector<2x32xf32>
    %24 = tpu.matmul %22, %23, %cst_11 {dimension_numbers = #tpu.dot_dimension_numbers<[1], [0], [0], [1], [0, 0, 1, 1], [], []>} : vector<2x32xf32>, vector<32x32xf32>, vector<2x32xf32> -> vector<2x32xf32>
    %c0_12 = arith.constant 0 : index
    %c0_13 = arith.constant 0 : index
    %25 = vector.load %arg4[%c0_12, %c0_13] : memref<1x32xf32, #tpu.memory_space<vmem>>, vector<1x32xf32>
    %26 = vector.broadcast %25 : vector<1x32xf32> to vector<2x32xf32>
    %27 = arith.addf %24, %26 : vector<2x32xf32>
    %cst_14 = arith.constant 5.000000e-01 : f32
    %28 = vector.broadcast %cst_14 : f32 to vector<2x32xf32>
    %29 = arith.mulf %28, %27 : vector<2x32xf32>
    %cst_15 = arith.constant 1.41421354 : f32
    %30 = vector.broadcast %cst_15 : f32 to vector<2x32xf32>
    %31 = arith.divf %27, %30 : vector<2x32xf32>
    %32 = math.erf %31 : vector<2x32xf32>
    %cst_16 = arith.constant 1.000000e+00 : f32
    %33 = vector.broadcast %cst_16 : f32 to vector<2x32xf32>
    %34 = arith.addf %33, %32 : vector<2x32xf32>
    %35 = arith.mulf %29, %34 : vector<2x32xf32>
    %c0_17 = arith.constant 0 : index
    %c0_18 = arith.constant 0 : index
    %36 = vector.load %arg5[%c0_17, %c0_18] : memref<32x1xf32, #tpu.memory_space<vmem>>, vector<32x1xf32>
    %cst_19 = arith.constant dense<0.000000e+00> : vector<2x1xf32>
    %37 = tpu.matmul %35, %36, %cst_19 {dimension_numbers = #tpu.dot_dimension_numbers<[1], [0], [0], [1], [0, 0, 1, 1], [], []>} : vector<2x32xf32>, vector<32x1xf32>, vector<2x1xf32> -> vector<2x1xf32>
    %c0_20 = arith.constant 0 : index
    %c0_21 = arith.constant 0 : index
    %38 = vector.load %arg6[%c0_20, %c0_21] : memref<1x1xf32, #tpu.memory_space<vmem>>, vector<1x1xf32>
    %39 = vector.broadcast %38 : vector<1x1xf32> to vector<2x1xf32>
    %40 = arith.addf %37, %39 : vector<2x1xf32>
    %41 = arith.negf %40 : vector<2x1xf32>
    %42 = math.exp %41 : vector<2x1xf32>
    %cst_22 = arith.constant 1.000000e+00 : f32
    %43 = vector.broadcast %cst_22 : f32 to vector<2x1xf32>
    %44 = arith.addf %43, %42 : vector<2x1xf32>
    %45 = arith.divf %43, %44 : vector<2x1xf32>
    %c0_23 = arith.constant 0 : index
    %c0_24 = arith.constant 0 : index
    %46 = vector.load %arg20[%c0_23, %c0_24] : memref<2x1xf32, #tpu.memory_space<vmem>>, vector<2x1xf32>
    tpu.vector_store %arg20[%c0_23, %c0_24], %45 {strides = array<i32>} : memref<2x1xf32, #tpu.memory_space<vmem>>, vector<2x1xf32>,
    %c0_25 = arith.constant 0 : index
    %c0_26 = arith.constant 0 : index
    %47 = vector.load %arg21[%c0_25, %c0_26] : memref<2x1xf32, #tpu.memory_space<vmem>>, vector<2x1xf32>
    tpu.vector_store %arg21[%c0_25, %c0_26], %45 {strides = array<i32>} : memref<2x1xf32, #tpu.memory_space<vmem>>, vector<2x1xf32>,
    %c0_27 = arith.constant 0 : index
    %c0_28 = arith.constant 0 : index
    %c0_29 = arith.constant 0 : index
    %48 = vector.load %arg7[%c0_27, %c0_28, %c0_29] : memref<3x1x32xf32, #tpu.memory_space<vmem>>, vector<1x1x32xf32>
    %49 = vector.shape_cast %48 : vector<1x1x32xf32> to vector<1x32xf32>
    %c0_30 = arith.constant 0 : index
    %c0_31 = arith.constant 0 : index
    %c0_32 = arith.constant 0 : index
    %50 = vector.load %arg8[%c0_30, %c0_31, %c0_32] : memref<3x1x32xf32, #tpu.memory_space<vmem>>, vector<1x1x32xf32>
    %51 = vector.shape_cast %50 : vector<1x1x32xf32> to vector<1x32xf32>
    %cst_33 = arith.constant dense<0.000000e+00> : vector<2xf32>
    %52 = vector.multi_reduction <add>, %35, %cst_33 [1] : vector<2x32xf32> to vector<2xf32>
    %53 = vector.shape_cast %52 : vector<2xf32> to vector<2x1xf32>
    %cst_34 = arith.constant 3.200000e+01 : f32
    %54 = vector.broadcast %cst_34 : f32 to vector<2x1xf32>
    %55 = arith.divf %53, %54 : vector<2x1xf32>
    %56 = vector.broadcast %55 : vector<2x1xf32> to vector<2x32xf32>
    %57 = arith.subf %35, %56 : vector<2x32xf32>
    %58 = arith.mulf %57, %57 : vector<2x32xf32>
    %cst_35 = arith.constant dense<0.000000e+00> : vector<2xf32>
    %59 = vector.multi_reduction <add>, %58, %cst_35 [1] : vector<2x32xf32> to vector<2xf32>
    %60 = vector.shape_cast %59 : vector<2xf32> to vector<2x1xf32>
    %cst_36 = arith.constant 3.200000e+01 : f32
    %61 = vector.broadcast %cst_36 : f32 to vector<2x1xf32>
    %62 = arith.divf %60, %61 : vector<2x1xf32>
    %cst_37 = arith.constant 9.99999974E-6 : f32
    %63 = vector.broadcast %cst_37 : f32 to vector<2x1xf32>
    %64 = arith.addf %62, %63 : vector<2x1xf32>
    %65 = math.rsqrt %64 : vector<2x1xf32>
    %66 = vector.broadcast %65 : vector<2x1xf32> to vector<2x32xf32>
    %67 = arith.mulf %57, %66 : vector<2x32xf32>
    %68 = vector.broadcast %49 : vector<1x32xf32> to vector<2x32xf32>
    %69 = arith.mulf %67, %68 : vector<2x32xf32>
    %70 = vector.broadcast %51 : vector<1x32xf32> to vector<2x32xf32>
    %71 = arith.addf %69, %70 : vector<2x32xf32>
    %c0_38 = arith.constant 0 : index
    %c0_39 = arith.constant 0 : index
    %c0_40 = arith.constant 0 : index
    %72 = vector.load %arg9[%c0_38, %c0_39, %c0_40] : memref<3x32x128xf32, #tpu.memory_space<vmem>>, vector<1x32x128xf32>
    %73 = vector.shape_cast %72 : vector<1x32x128xf32> to vector<32x128xf32>
    %cst_41 = arith.constant dense<0.000000e+00> : vector<2x128xf32>
    %74 = tpu.matmul %71, %73, %cst_41 {dimension_numbers = #tpu.dot_dimension_numbers<[1], [0], [0], [1], [0, 0, 1, 1], [], []>} : vector<2x32xf32>, vector<32x128xf32>, vector<2x128xf32> -> vector<2x128xf32>
    %c0_42 = arith.constant 0 : index
    %c0_43 = arith.constant 0 : index
    %c0_44 = arith.constant 0 : index
    %75 = vector.load %arg10[%c0_42, %c0_43, %c0_44] : memref<3x1x128xf32, #tpu.memory_space<vmem>>, vector<1x1x128xf32>
    %76 = vector.shape_cast %75 : vector<1x1x128xf32> to vector<1x128xf32>
    %77 = vector.broadcast %76 : vector<1x128xf32> to vector<2x128xf32>
    %78 = arith.addf %74, %77 : vector<2x128xf32>
    %cst_45 = arith.constant 5.000000e-01 : f32
    %79 = vector.broadcast %cst_45 : f32 to vector<2x128xf32>
    %80 = arith.mulf %79, %78 : vector<2x128xf32>
    %cst_46 = arith.constant 1.41421354 : f32
    %81 = vector.broadcast %cst_46 : f32 to vector<2x128xf32>
    %82 = arith.divf %78, %81 : vector<2x128xf32>
    %83 = math.erf %82 : vector<2x128xf32>
    %cst_47 = arith.constant 1.000000e+00 : f32
    %84 = vector.broadcast %cst_47 : f32 to vector<2x128xf32>
    %85 = arith.addf %84, %83 : vector<2x128xf32>
    %86 = arith.mulf %80, %85 : vector<2x128xf32>
    %c0_48 = arith.constant 0 : index
    %c0_49 = arith.constant 0 : index
    %87 = vector.load %arg11[%c0_48, %c0_49] : memref<128x25xf32, #tpu.memory_space<vmem>>, vector<128x25xf32>
    %cst_50 = arith.constant dense<0.000000e+00> : vector<2x25xf32>
    %88 = tpu.matmul %86, %87, %cst_50 {dimension_numbers = #tpu.dot_dimension_numbers<[1], [0], [0], [1], [0, 0, 1, 1], [], []>} : vector<2x128xf32>, vector<128x25xf32>, vector<2x25xf32> -> vector<2x25xf32>
    %c0_51 = arith.constant 0 : index
    %c0_52 = arith.constant 0 : index
    %89 = vector.load %arg12[%c0_51, %c0_52] : memref<1x25xf32, #tpu.memory_space<vmem>>, vector<1x25xf32>
    %90 = vector.broadcast %89 : vector<1x25xf32> to vector<2x25xf32>
    %91 = arith.addf %88, %90 : vector<2x25xf32>
    %c0_53 = arith.constant 0 : index
    %c0_54 = arith.constant 0 : index
    %92 = vector.load %arg17[%c0_53, %c0_54] : memref<2x25xf32, #tpu.memory_space<vmem>>, vector<2x25xf32>
    tpu.vector_store %arg17[%c0_53, %c0_54], %91 {strides = array<i32>} : memref<2x25xf32, #tpu.memory_space<vmem>>, vector<2x25xf32>,
    %c1 = arith.constant 1 : index
    %c0_55 = arith.constant 0 : index
    %c0_56 = arith.constant 0 : index
    %93 = vector.load %arg7[%c1, %c0_55, %c0_56] : memref<3x1x32xf32, #tpu.memory_space<vmem>>, vector<1x1x32xf32>
    %94 = vector.shape_cast %93 : vector<1x1x32xf32> to vector<1x32xf32>
    %c1_57 = arith.constant 1 : index
    %c0_58 = arith.constant 0 : index
    %c0_59 = arith.constant 0 : index
    %95 = vector.load %arg8[%c1_57, %c0_58, %c0_59] : memref<3x1x32xf32, #tpu.memory_space<vmem>>, vector<1x1x32xf32>
    %96 = vector.shape_cast %95 : vector<1x1x32xf32> to vector<1x32xf32>
    %cst_60 = arith.constant dense<0.000000e+00> : vector<2xf32>
    %97 = vector.multi_reduction <add>, %35, %cst_60 [1] : vector<2x32xf32> to vector<2xf32>
    %98 = vector.shape_cast %97 : vector<2xf32> to vector<2x1xf32>
    %cst_61 = arith.constant 3.200000e+01 : f32
    %99 = vector.broadcast %cst_61 : f32 to vector<2x1xf32>
    %100 = arith.divf %98, %99 : vector<2x1xf32>
    %101 = vector.broadcast %100 : vector<2x1xf32> to vector<2x32xf32>
    %102 = arith.subf %35, %101 : vector<2x32xf32>
    %103 = arith.mulf %102, %102 : vector<2x32xf32>
    %cst_62 = arith.constant dense<0.000000e+00> : vector<2xf32>
    %104 = vector.multi_reduction <add>, %103, %cst_62 [1] : vector<2x32xf32> to vector<2xf32>
    %105 = vector.shape_cast %104 : vector<2xf32> to vector<2x1xf32>
    %cst_63 = arith.constant 3.200000e+01 : f32
    %106 = vector.broadcast %cst_63 : f32 to vector<2x1xf32>
    %107 = arith.divf %105, %106 : vector<2x1xf32>
    %cst_64 = arith.constant 9.99999974E-6 : f32
    %108 = vector.broadcast %cst_64 : f32 to vector<2x1xf32>
    %109 = arith.addf %107, %108 : vector<2x1xf32>
    %110 = math.rsqrt %109 : vector<2x1xf32>
    %111 = vector.broadcast %110 : vector<2x1xf32> to vector<2x32xf32>
    %112 = arith.mulf %102, %111 : vector<2x32xf32>
    %113 = vector.broadcast %94 : vector<1x32xf32> to vector<2x32xf32>
    %114 = arith.mulf %112, %113 : vector<2x32xf32>
    %115 = vector.broadcast %96 : vector<1x32xf32> to vector<2x32xf32>
    %116 = arith.addf %114, %115 : vector<2x32xf32>
    %c1_65 = arith.constant 1 : index
    %c0_66 = arith.constant 0 : index
    %c0_67 = arith.constant 0 : index
    %117 = vector.load %arg9[%c1_65, %c0_66, %c0_67] : memref<3x32x128xf32, #tpu.memory_space<vmem>>, vector<1x32x128xf32>
    %118 = vector.shape_cast %117 : vector<1x32x128xf32> to vector<32x128xf32>
    %cst_68 = arith.constant dense<0.000000e+00> : vector<2x128xf32>
    %119 = tpu.matmul %116, %118, %cst_68 {dimension_numbers = #tpu.dot_dimension_numbers<[1], [0], [0], [1], [0, 0, 1, 1], [], []>} : vector<2x32xf32>, vector<32x128xf32>, vector<2x128xf32> -> vector<2x128xf32>
    %c1_69 = arith.constant 1 : index
    %c0_70 = arith.constant 0 : index
    %c0_71 = arith.constant 0 : index
    %120 = vector.load %arg10[%c1_69, %c0_70, %c0_71] : memref<3x1x128xf32, #tpu.memory_space<vmem>>, vector<1x1x128xf32>
    %121 = vector.shape_cast %120 : vector<1x1x128xf32> to vector<1x128xf32>
    %122 = vector.broadcast %121 : vector<1x128xf32> to vector<2x128xf32>
    %123 = arith.addf %119, %122 : vector<2x128xf32>
    %cst_72 = arith.constant 5.000000e-01 : f32
    %124 = vector.broadcast %cst_72 : f32 to vector<2x128xf32>
    %125 = arith.mulf %124, %123 : vector<2x128xf32>
    %cst_73 = arith.constant 1.41421354 : f32
    %126 = vector.broadcast %cst_73 : f32 to vector<2x128xf32>
    %127 = arith.divf %123, %126 : vector<2x128xf32>
    %128 = math.erf %127 : vector<2x128xf32>
    %cst_74 = arith.constant 1.000000e+00 : f32
    %129 = vector.broadcast %cst_74 : f32 to vector<2x128xf32>
    %130 = arith.addf %129, %128 : vector<2x128xf32>
    %131 = arith.mulf %125, %130 : vector<2x128xf32>
    %c0_75 = arith.constant 0 : index
    %c0_76 = arith.constant 0 : index
    %132 = vector.load %arg13[%c0_75, %c0_76] : memref<128x25xf32, #tpu.memory_space<vmem>>, vector<128x25xf32>
    %cst_77 = arith.constant dense<0.000000e+00> : vector<2x25xf32>
    %133 = tpu.matmul %131, %132, %cst_77 {dimension_numbers = #tpu.dot_dimension_numbers<[1], [0], [0], [1], [0, 0, 1, 1], [], []>} : vector<2x128xf32>, vector<128x25xf32>, vector<2x25xf32> -> vector<2x25xf32>
    %c0_78 = arith.constant 0 : index
    %c0_79 = arith.constant 0 : index
    %134 = vector.load %arg14[%c0_78, %c0_79] : memref<1x25xf32, #tpu.memory_space<vmem>>, vector<1x25xf32>
    %135 = vector.broadcast %134 : vector<1x25xf32> to vector<2x25xf32>
    %136 = arith.addf %133, %135 : vector<2x25xf32>
    %c0_80 = arith.constant 0 : index
    %c0_81 = arith.constant 0 : index
    %137 = vector.load %arg18[%c0_80, %c0_81] : memref<2x25xf32, #tpu.memory_space<vmem>>, vector<2x25xf32>
    tpu.vector_store %arg18[%c0_80, %c0_81], %136 {strides = array<i32>} : memref<2x25xf32, #tpu.memory_space<vmem>>, vector<2x25xf32>,
    %c2 = arith.constant 2 : index
    %c0_82 = arith.constant 0 : index
    %c0_83 = arith.constant 0 : index
    %138 = vector.load %arg7[%c2, %c0_82, %c0_83] : memref<3x1x32xf32, #tpu.memory_space<vmem>>, vector<1x1x32xf32>
    %139 = vector.shape_cast %138 : vector<1x1x32xf32> to vector<1x32xf32>
    %c2_84 = arith.constant 2 : index
    %c0_85 = arith.constant 0 : index
    %c0_86 = arith.constant 0 : index
    %140 = vector.load %arg8[%c2_84, %c0_85, %c0_86] : memref<3x1x32xf32, #tpu.memory_space<vmem>>, vector<1x1x32xf32>
    %141 = vector.shape_cast %140 : vector<1x1x32xf32> to vector<1x32xf32>
    %cst_87 = arith.constant dense<0.000000e+00> : vector<2xf32>
    %142 = vector.multi_reduction <add>, %35, %cst_87 [1] : vector<2x32xf32> to vector<2xf32>
    %143 = vector.shape_cast %142 : vector<2xf32> to vector<2x1xf32>
    %cst_88 = arith.constant 3.200000e+01 : f32
    %144 = vector.broadcast %cst_88 : f32 to vector<2x1xf32>
    %145 = arith.divf %143, %144 : vector<2x1xf32>
    %146 = vector.broadcast %145 : vector<2x1xf32> to vector<2x32xf32>
    %147 = arith.subf %35, %146 : vector<2x32xf32>
    %148 = arith.mulf %147, %147 : vector<2x32xf32>
    %cst_89 = arith.constant dense<0.000000e+00> : vector<2xf32>
    %149 = vector.multi_reduction <add>, %148, %cst_89 [1] : vector<2x32xf32> to vector<2xf32>
    %150 = vector.shape_cast %149 : vector<2xf32> to vector<2x1xf32>
    %cst_90 = arith.constant 3.200000e+01 : f32
    %151 = vector.broadcast %cst_90 : f32 to vector<2x1xf32>
    %152 = arith.divf %150, %151 : vector<2x1xf32>
    %cst_91 = arith.constant 9.99999974E-6 : f32
    %153 = vector.broadcast %cst_91 : f32 to vector<2x1xf32>
    %154 = arith.addf %152, %153 : vector<2x1xf32>
    %155 = math.rsqrt %154 : vector<2x1xf32>
    %156 = vector.broadcast %155 : vector<2x1xf32> to vector<2x32xf32>
    %157 = arith.mulf %147, %156 : vector<2x32xf32>
    %158 = vector.broadcast %139 : vector<1x32xf32> to vector<2x32xf32>
    %159 = arith.mulf %157, %158 : vector<2x32xf32>
    %160 = vector.broadcast %141 : vector<1x32xf32> to vector<2x32xf32>
    %161 = arith.addf %159, %160 : vector<2x32xf32>
    %c2_92 = arith.constant 2 : index
    %c0_93 = arith.constant 0 : index
    %c0_94 = arith.constant 0 : index
    %162 = vector.load %arg9[%c2_92, %c0_93, %c0_94] : memref<3x32x128xf32, #tpu.memory_space<vmem>>, vector<1x32x128xf32>
    %163 = vector.shape_cast %162 : vector<1x32x128xf32> to vector<32x128xf32>
    %cst_95 = arith.constant dense<0.000000e+00> : vector<2x128xf32>
    %164 = tpu.matmul %161, %163, %cst_95 {dimension_numbers = #tpu.dot_dimension_numbers<[1], [0], [0], [1], [0, 0, 1, 1], [], []>} : vector<2x32xf32>, vector<32x128xf32>, vector<2x128xf32> -> vector<2x128xf32>
    %c2_96 = arith.constant 2 : index
    %c0_97 = arith.constant 0 : index
    %c0_98 = arith.constant 0 : index
    %165 = vector.load %arg10[%c2_96, %c0_97, %c0_98] : memref<3x1x128xf32, #tpu.memory_space<vmem>>, vector<1x1x128xf32>
    %166 = vector.shape_cast %165 : vector<1x1x128xf32> to vector<1x128xf32>
    %167 = vector.broadcast %166 : vector<1x128xf32> to vector<2x128xf32>
    %168 = arith.addf %164, %167 : vector<2x128xf32>
    %cst_99 = arith.constant 5.000000e-01 : f32
    %169 = vector.broadcast %cst_99 : f32 to vector<2x128xf32>
    %170 = arith.mulf %169, %168 : vector<2x128xf32>
    %cst_100 = arith.constant 1.41421354 : f32
    %171 = vector.broadcast %cst_100 : f32 to vector<2x128xf32>
    %172 = arith.divf %168, %171 : vector<2x128xf32>
    %173 = math.erf %172 : vector<2x128xf32>
    %cst_101 = arith.constant 1.000000e+00 : f32
    %174 = vector.broadcast %cst_101 : f32 to vector<2x128xf32>
    %175 = arith.addf %174, %173 : vector<2x128xf32>
    %176 = arith.mulf %170, %175 : vector<2x128xf32>
    %c0_102 = arith.constant 0 : index
    %c0_103 = arith.constant 0 : index
    %177 = vector.load %arg15[%c0_102, %c0_103] : memref<128x13xf32, #tpu.memory_space<vmem>>, vector<128x13xf32>
    %cst_104 = arith.constant dense<0.000000e+00> : vector<2x13xf32>
    %178 = tpu.matmul %176, %177, %cst_104 {dimension_numbers = #tpu.dot_dimension_numbers<[1], [0], [0], [1], [0, 0, 1, 1], [], []>} : vector<2x128xf32>, vector<128x13xf32>, vector<2x13xf32> -> vector<2x13xf32>
    %c0_105 = arith.constant 0 : index
    %c0_106 = arith.constant 0 : index
    %179 = vector.load %arg16[%c0_105, %c0_106] : memref<1x13xf32, #tpu.memory_space<vmem>>, vector<1x13xf32>
    %180 = vector.broadcast %179 : vector<1x13xf32> to vector<2x13xf32>
    %181 = arith.addf %178, %180 : vector<2x13xf32>
    %c0_107 = arith.constant 0 : index
    %c0_108 = arith.constant 0 : index
    %182 = vector.load %arg19[%c0_107, %c0_108] : memref<2x13xf32, #tpu.memory_space<vmem>>, vector<2x13xf32>
    tpu.vector_store %arg19[%c0_107, %c0_108], %181 {strides = array<i32>} : memref<2x13xf32, #tpu.memory_space<vmem>>, vector<2x13xf32>,
    return
  }
}

</mosaic_0001>

<bundles_post_ra>
// kernel: tpu_custom_call.1
= control target key start
LH: loop header
LB: loop body
LE: loop exit
PB: predicated region body
PF: predicated region fallthrough
CT: control target
= control target key end

     0   :  { %s1317_s0 = inlined_call_operand.vmem [shape: f32[2,32], index: 0, kind: input, shape index: {}]   ;;  %s1318_s1 = inlined_call_operand.vmem [shape: f32[1,32], index: 1, kind: input, shape index: {}]   ;;  %s1319_s2 = inlined_call_operand.vmem [shape: f32[1,32], index: 2, kind: input, shape index: {}]   ;;  %s1320_s3 = inlined_call_operand.vmem [shape: f32[32,32], index: 3, kind: input, shape index: {}]   ;;  %s1321_s4 = inlined_call_operand.vmem [shape: f32[1,32], index: 4, kind: input, shape index: {}]   ;;  %s1322_s5 = inlined_call_operand.vmem [shape: f32[32,1], index: 5, kind: input, shape index: {}]   ;;  %s1323_s6 = inlined_call_operand.<no memory space> [shape: f32[1,1], index: 6, kind: input, shape index: {}]   ;;  %s1324_s7 = inlined_call_operand.vmem [shape: f32[3,1,32], index: 7, kind: input, shape index: {}]   ;;  %s1325_s8 = inlined_call_operand.vmem [shape: f32[3,1,32], index: 8, kind: input, shape index: {}]   ;;  %s1326_s9 = inlined_call_operand.vmem [shape: f32[3,32,128], index: 9, kind: input, shape index: {}]   ;;  %s1327_s10 = inlined_call_operand.vmem [shape: f32[3,1,128], index: 10, kind: input, shape index: {}]   ;;  %s1328_s11 = inlined_call_operand.vmem [shape: f32[128,25], index: 11, kind: input, shape index: {}]   ;;  %s1329_s12 = inlined_call_operand.vmem [shape: f32[1,25], index: 12, kind: input, shape index: {}]   ;;  %s1330_s13 = inlined_call_operand.vmem [shape: f32[128,25], index: 13, kind: input, shape index: {}]   ;;  %s1331_s14 = inlined_call_operand.vmem [shape: f32[1,25], index: 14, kind: input, shape index: {}]   ;;  %s1332_s15 = inlined_call_operand.vmem [shape: f32[128,13], index: 15, kind: input, shape index: {}]   ;;  %s1333_s16 = inlined_call_operand.vmem [shape: f32[1,13], index: 16, kind: input, shape index: {}]   ;;  %s1334_s17 = inlined_call_operand.hbm [shape: f32[2,25], index: 17, kind: output, shape index: {0}]   ;;  %s1335_s18 = inlined_call_operand.hbm [shape: f32[2,25], index: 18, kind: output, shape index: {1}]   ;;  %s1336_s19 = inlined_call_operand.hbm [shape: f32[2,13], index: 19, kind: output, shape index: {2}]   ;;  %s1337_s20 = inlined_call_operand.vmem [shape: f32[2,1], index: 20, kind: output, shape index: {3}]   ;;  %s1338_s21 = inlined_call_operand.vmem [shape: f32[2,1], index: 21, kind: output, shape index: {4}]  }
   0x1   :  { %1341 = sst [smem:[#allocation10_spill]] %s1317_s0  ;;  %v27_v0 = vstv %s1323_s6 }
   0x2   :  { %1342 = sst [smem:[#allocation11_spill]] %s1318_s1  ;;  %28 = vst [vmem:[#allocation2] sm:$0x1] %v27_v0 }
   0x3   :  { %1343 = sst [smem:[#allocation12_spill]] %s1319_s2 }
   0x4   :  { %1344 = sst [smem:[#allocation13_spill]] %s1320_s3 }
   0x5   :  { %1345 = sst [smem:[#allocation14_spill]] %s1321_s4 }
   0x6   :  { %1346 = sst [smem:[#allocation15_spill]] %s1322_s5 }
   0x7   :  { %29 = vsyncpa [#allocation4], 0  ;;  %s1347_s3 = sld [smem:[#allocation10_spill]]  ;;  %vm68_vm0 = vcmask 254976  }
   0xd   :  { %v65_v1 = vld [vmem:[%s1347_s3] sm:$0x3] }
   0xe   :  { %v69_v2 = vsel %vm68_vm0, %v65_v1, 0.0 }
   0xf   :  { %70 = vadd.xlane.f32.xlu0 %v69_v2 }
  0x10   :  { %30 = vsyncpa [#allocation6], 0  ;;  %v848_v3 = vmov 32.0   ;;  %s1348_s29 = sld [smem:[#allocation13_spill]]  ;;  %vm114_vm5 = vcmask 261120   ;;  %vm239_vm14 = vcmask 1024  }
  0x11   :  { %752 = vrcp.f32 %v848_v3  ;;  %s1349_s2 = sld [smem:[#allocation11_spill]]  ;;  %v849_v34 = vmov 1.4142135   ;;  %s850_s1 = smov [#allocation5]  }
  0x12   :  { %s1350_s27 = sld [smem:[#allocation12_spill]]  ;;  %s668_s24 = sshll.u32 %s850_s1, 4  ;;  %s669_s24 = int_to_ptr.vmem [resolvable:$true] %s668_s24 }
  0x13   :  { %s1351_s28 = sld [smem:[#allocation14_spill]]  ;;  %s670_s26 = sshll.u32 %s1335_s18, 4  ;;  %s671_s26 = int_to_ptr.hbm [resolvable:$true] %s670_s26 }
  0x14   :  { %s1352_s4 = sld [smem:[#allocation15_spill]]  ;;  %s852_s18 = smov [#allocation7]  }
  0x15   :  { %s681_s0 = sshll.u32 %s1336_s19, 4  ;;  %s682_s0 = int_to_ptr.hbm [resolvable:$true] %s681_s0 }
  0x16   :  { %v109_v15 = vld [vmem:[%s1348_s29 + $0x18] sm:$0xff]  ;;  %v108_v16 = vld [vmem:[%s1348_s29 + $0x10] sm:$0xff]  ;;  %v107_v17 = vld [vmem:[%s1348_s29 + $0x8] sm:$0xff] }
  0x17   :  { %v753_v4 = vpop.eup %752  ;;  %130 = vmatpush.msra.mxu2 %v109_v15  ;;  %v106_v18 = vld [vmem:[%s1348_s29] sm:$0xff] }
  0x18   :  { %v73_v5 = vmul.f32 32.0, %v753_v4  ;;  %vm77_vm1 = vweird.f32 %v753_v4  ;;  %v736_v28 = vld [vmem:[%s1349_s2] ss:$0 sm:$0xff] }
  0x19   :  { %131 = vmatpush.msra.mxu2 %v108_v16  ;;  %v737_v31 = vld [vmem:[%s1350_s27] ss:$0 sm:$0xff]  ;;  %s851_s27 = smov [#allocation3]  }
  0x1a   :  { %v74_v6 = vsub.f32 1.0, %v73_v5  ;;  %v738_v40 = vld [vmem:[%s1351_s28] ss:$0 sm:$0xff]  ;;  %v192_v53 = vld [vmem:[%s1352_s4 + $0x18] sm:$0xff]  ;;  %v191_v54 = vld [vmem:[%s1352_s4 + $0x10] sm:$0xff]  ;;  %s657_s3 = sshll.u32 %s851_s27, 4  ;;  %s658_s3 = int_to_ptr.vmem [resolvable:$true] %s657_s3 }
  0x1b   :  { %132 = vmatpush.msra.mxu2 %v107_v17  ;;  %212 = vmatpush.msra.mxu1 %v192_v53  ;;  %v190_v57 = vld [vmem:[%s1352_s4 + $0x8] sm:$0xff]  ;;  %v189_v59 = vld [vmem:[%s1352_s4] sm:$0xff]  ;;  %s659_s28 = sshll.u32 %s1334_s17, 4  ;;  %s660_s28 = int_to_ptr.hbm [resolvable:$true] %s659_s28 }
  0x1c   :  { %v75_v7 = vmul.f32 %v753_v4, %v74_v6  ;;  %v716_v53 = vld [vmem:[%s1326_s9 + $0x28] sm:$0xff] }
  0x1d   :  { %133 = vmatpush.msra.mxu2 %v106_v18  ;;  %213 = vmatpush.msra.mxu1 %v191_v54 }
  0x1e   :  { %v76_v8 = vadd.f32 %v753_v4, %v75_v7 }
  0x1f   :  { %214 = vmatpush.msra.mxu1 %v190_v57 }
  0x20   :  { %v970_v9 = vsel %vm77_vm1, %v753_v4, %v76_v8 }
  0x21   :  { %215 = vmatpush.msra.mxu1 %v189_v59 }
  0x82   :  { %v71_v10 = vpop.xlane.xlu0 %70 }
  0x83   :  { %v79_v11 = vmul.f32 %v970_v9, %v71_v10 }
  0x85   :  { %v80_v12 = vsub.f32 %v65_v1, %v79_v11 }
  0x87   :  { %v81_v13 = vmul.f32 %v80_v12, %v80_v12 }
  0x89   :  { %v82_v14 = vsel %vm68_vm0, %v81_v13, 0.0 }
  0x8a   :  { %83 = vadd.xlane.f32.xlu0 %v82_v14 }
  0xfd   :  { %v84_v19 = vpop.xlane.xlu0 %83 }
  0xfe   :  { %v85_v20 = vmul.f32 %v84_v19, %v970_v9 }
 0x100   :  { %v86_v21 = vadd.f32 1e-05, %v85_v20 }
 0x102   :  { %754 = vrsqrt.f32 %v86_v21  ;;  %vm93_vm3 = vweird.f32 %v86_v21 }
 0x103   :  { %756 = vrcp.f32 %v849_v34 }
 0x108   :  { %v755_v22 = vpop.eup %754 }
 0x109   :  { %v88_v23 = vmul.f32 %v755_v22, %v86_v21  ;;  %vm94_vm2 = vweird.f32 %v755_v22  ;;  %v757_v35 = vpop.eup %756 }
 0x10a   :  { %vm95_vm4 = vmor %vm93_vm3, %vm94_vm2  ;;  %v140_v36 = vmul.f32 1.4142135, %v757_v35  ;;  %vm144_vm6 = vweird.f32 %v757_v35 }
 0x10b   :  { %v89_v24 = vmul.f32 %v755_v22, %v88_v23 }
 0x10c   :  { %v141_v37 = vsub.f32 1.0, %v140_v36 }
 0x10d   :  { %v90_v25 = vmul.f32 0.5, %v89_v24 }
 0x10e   :  { %v142_v38 = vmul.f32 %v757_v35, %v141_v37 }
 0x10f   :  { %v91_v26 = vsub.f32 1.5, %v90_v25 }
 0x110   :  { %v143_v39 = vadd.f32 %v757_v35, %v142_v38 }
 0x111   :  { %v92_v27 = vmul.f32 %v755_v22, %v91_v26 }
 0x112   :  { %v997_v42 = vsel %vm144_vm6, %v757_v35, %v143_v39 }
 0x113   :  { %v96_v29 = vsel %vm95_vm4, %v755_v22, %v92_v27 }
 0x114   :  { %v97_v30 = vmul.f32 %v96_v29, %v80_v12  ;;  %v739_v29 = vld [vmem:[#allocation2] ss:$0 sm:$0xff] }
 0x116   :  { %v101_v32 = vmul.f32 %v736_v28, %v97_v30 }
 0x118   :  { %v105_v33 = vadd.f32 %v737_v31, %v101_v32 }
 0x11a   :  { %707 = vmatmul.msk.f32.vlgmr.msra.gmra.mxu2 %vm114_vm5, %v105_v33 }
 0x19d   :  { %v135_v41 = vpop.f32.mrf.mxu2 }
 0x19e   :  { %v136_v43 = vadd.f32 %v738_v40, %v135_v41 }
 0x1a0   :  { %v146_v44 = vmul.f32 %v997_v42, %v136_v43  ;;  %v138_v21 = vmul.f32 0.5, %v136_v43 }
 0x1a2   :  { %v147_v45 = vmul.f32 %v146_v44, %v146_v44 }
 0x1a4   :  { %v148_v46 = vmin.f32 %v147_v45, 16.0 }
 0x1a6   :  { %v149_v47 = vmul.f32 2.1237322e-06, %v148_v46  ;;  %v160_v48 = vmul.f32 3.8918573e-05, %v148_v46 }
 0x1a8   :  { %v150_v49 = vadd.f32 0.00028619796, %v149_v47  ;;  %v161_v50 = vadd.f32 0.001143296, %v160_v48  ;;  %v277_v47 = vld [vmem:[%s1326_s9 + $0x18] sm:$0xff]  ;;  %v276_v48 = vld [vmem:[%s1326_s9 + $0x10] sm:$0xff] }
 0x1a9   :  { %297 = vmatpush.msrb.mxu2 %v277_v47 }
 0x1aa   :  { %v151_v51 = vmul.f32 %v150_v49, %v148_v46  ;;  %v162_v52 = vmul.f32 %v161_v50, %v148_v46  ;;  %v275_v49 = vld [vmem:[%s1326_s9 + $0x8] sm:$0xff]  ;;  %v274_v50 = vld [vmem:[%s1326_s9] sm:$0xff] }
 0x1ab   :  { %298 = vmatpush.msrb.mxu2 %v276_v48 }
 0x1ac   :  { %v163_v55 = vadd.f32 0.014752088, %v162_v52  ;;  %v152_v56 = vadd.f32 0.0036580483, %v151_v51  ;;  %v718_v51 = vld [vmem:[%s1326_s9 + $0x38] sm:$0xff]  ;;  %v717_v52 = vld [vmem:[%s1326_s9 + $0x30] sm:$0xff] }
 0x1ad   :  { %299 = vmatpush.msrb.mxu2 %v275_v49 }
 0x1ae   :  { %v164_v58 = vmul.f32 %v163_v55, %v148_v46  ;;  %v153_v61 = vmul.f32 %v152_v56, %v148_v46  ;;  %v715_v56 = vld [vmem:[%s1326_s9 + $0x20] sm:$0xff] }
 0x1af   :  { %300 = vmatpush.msrb.mxu2 %v274_v50  ;;  %v354_v50 = vld [vmem:[%s1328_s11 + $0x28] sm:$0xff] }
 0x1b0   :  { %v165_v60 = vadd.f32 0.112945676, %v164_v58  ;;  %v154_v0 = vadd.f32 0.05243302, %v153_v61 }
 0x1b1   :  { %428 = vmatpush.msra.mxu2 %v718_v51  ;;  %v489_v51 = vld [vmem:[%s1330_s13 + $0x48] sm:$0xff] }
 0x1b2   :  { %v166_v62 = vmul.f32 %v165_v60, %v148_v46  ;;  %v155_v3 = vmul.f32 %v154_v0, %v148_v46 }
 0x1b3   :  { %429 = vmatpush.msra.mxu2 %v717_v52  ;;  %v623_v52 = vld [vmem:[%s1332_s15 + $0x68] sm:$0xff] }
 0x1b4   :  { %v167_v63 = vadd.f32 0.4994258, %v166_v62  ;;  %v156_v4 = vadd.f32 0.18741608, %v155_v3 }
 0x1b5   :  { %430 = vmatpush.msra.mxu2 %v716_v53  ;;  %v748_v53 = vld [vmem:[%s1327_s10 + $0x2] ss:$0 sm:$0xff] }
 0x1b6   :  { %v168_v1 = vmul.f32 %v167_v63, %v148_v46  ;;  %v157_v6 = vmul.f32 %v156_v4, %v148_v46 }
 0x1b7   :  { %431 = vmatpush.msra.mxu2 %v715_v56 }
 0x1b8   :  { %v169_v2 = vadd.f32 1.0, %v168_v1  ;;  %v158_v11 = vadd.f32 1.1283791, %v157_v6  ;;  %v727_v6 = vld [vmem:[%s1326_s9 + $0x58] sm:$0xff] }
 0x1ba   :  { %758 = vrcp.f32 %v169_v2  ;;  %v181_v10 = vand.u32 2147483648, %v169_v2  ;;  %v179_v13 = vand.u32 2147483647, %v169_v2  ;;  %vm175_vm8 = vweird.f32 %v169_v2 }
 0x1bb   :  { %v159_v16 = vmul.f32 %v158_v11, %v146_v44  ;;  %v725_v11 = vld [vmem:[%s1326_s9 + $0x48] sm:$0xff] }
 0x1bc   :  { %v182_v15 = vor.u32 1.1754944e-38, %v181_v10  ;;  %vm180_vm10 = vcmp.eq.f32.partialorder %v179_v13, 8.507059e+37  ;;  %v743_v10 = vld [vmem:[%s1325_s8 + $0x1] ss:$0 sm:$0xff] }
 0x1c0   :  { %v759_v5 = vpop.eup %758 }
 0x1c1   :  { %v171_v7 = vmul.f32 %v759_v5, %v169_v2  ;;  %vm176_vm7 = vweird.f32 %v759_v5  ;;  %v741_v2 = vld [vmem:[%s1325_s8] ss:$0 sm:$0xff] }
 0x1c2   :  { %vm177_vm9 = vmor %vm175_vm8, %vm176_vm7 }
 0x1c3   :  { %v172_v8 = vsub.f32 1.0, %v171_v7  ;;  %v726_v7 = vld [vmem:[%s1326_s9 + $0x50] sm:$0xff] }
 0x1c5   :  { %v173_v12 = vmul.f32 %v759_v5, %v172_v8 }
 0x1c7   :  { %v174_v14 = vadd.f32 %v759_v5, %v173_v12  ;;  %v724_v12 = vld [vmem:[%s1326_s9 + $0x40] sm:$0xff] }
 0x1c9   :  { %v178_v17 = vsel %vm177_vm9, %v759_v5, %v174_v14  ;;  %v742_v5 = vld [vmem:[%s1324_s7 + $0x1] ss:$0 sm:$0xff]  ;;  %v744_v14 = vld [vmem:[%s1324_s7 + $0x2] ss:$0 sm:$0xff] }
 0x1ca   :  { %v183_v18 = vsel %vm180_vm10, %v182_v15, %v178_v17 }
 0x1cb   :  { %v184_v19 = vmul.f32 %v183_v18, %v159_v16  ;;  %v745_v16 = vld [vmem:[%s1325_s8 + $0x2] ss:$0 sm:$0xff]  ;;  %v364_v18 = vld [vmem:[%s1328_s11 + $0x78] sm:$0xff] }
 0x1cc   :  { %369 = vmatpush.msra.mxu3 %v364_v18 }
 0x1cd   :  { %v708_v20 = vclamps-f32 %v184_v19, 1.0  ;;  %v363_v19 = vld [vmem:[%s1328_s11 + $0x70] sm:$0xff] }
 0x1ce   :  { %370 = vmatpush.msra.mxu3 %v363_v19 }
 0x1cf   :  { %v187_v22 = vadd.f32 1.0, %v708_v20  ;;  %v362_v20 = vld [vmem:[%s1328_s11 + $0x68] sm:$0xff] }
 0x1d0   :  { %371 = vmatpush.msra.mxu3 %v362_v20 }
 0x1d1   :  { %v188_v23 = vmul.f32 %v187_v22, %v138_v21  ;;  %v746_v21 = vld [vmem:[%s1327_s10] ss:$0 sm:$0xff] }
 0x1d2   :  { %v361_v22 = vld [vmem:[%s1328_s11 + $0x60] sm:$0xff] }
 0x1d3   :  { %709 = vmatmul.msk.f32.vlgmr.msra.gmra.mxu1 %vm114_vm5, %v188_v23  ;;  %v244_v24 = vsel %vm68_vm0, %v188_v23, 0.0  ;;  %372 = vmatpush.msra.mxu3 %v361_v22  ;;  %v484_v22 = vld [vmem:[%s1330_s13 + $0x20] sm:$0xff] }
 0x1d4   :  { %245 = vadd.xlane.f32.xlu1 %v244_v24  ;;  %v495_v24 = vld [vmem:[%s1330_s13 + $0x78] sm:$0xff] }
 0x1d5   :  { %500 = vmatpush.msrb.mxu1 %v495_v24 }
 0x247   :  { %v246_v25 = vpop.xlane.xlu1 %245 }
 0x248   :  { %v247_v26 = vmul.f32 %v246_v25, %v970_v9 }
 0x24a   :  { %v248_v27 = vsub.f32 %v188_v23, %v247_v26  ;;  %v360_v23 = vld [vmem:[%s1328_s11 + $0x58] sm:$0xff] }
 0x24b   :  { %373 = vmatpush.msra.mxu3 %v360_v23  ;;  %v618_v23 = vld [vmem:[%s1332_s15 + $0x40] sm:$0xff] }
 0x24c   :  { %v249_v28 = vmul.f32 %v248_v27, %v248_v27 }
 0x24e   :  { %v250_v30 = vsel %vm68_vm0, %v249_v28, 0.0  ;;  %v494_v28 = vld [vmem:[%s1330_s13 + $0x70] sm:$0xff] }
 0x24f   :  { %251 = vadd.xlane.f32.xlu1 %v250_v30  ;;  %501 = vmatpush.msrb.mxu1 %v494_v28  ;;  %v358_v30 = vld [vmem:[%s1328_s11 + $0x48] sm:$0xff] }
 0x250   :  { %v217_v31 = vpop.f32.mrf.mxu1 }
 0x251   :  { %v218_v32 = vadd.f32 %v739_v29, %v217_v31  ;;  %v493_v31 = vld [vmem:[%s1330_s13 + $0x68] sm:$0xff] }
 0x252   :  { %502 = vmatpush.msrb.mxu1 %v493_v31  ;;  %v483_v31 = vld [vmem:[%s1330_s13 + $0x18] sm:$0xff] }
 0x253   :  { %v710_v33 = vmul.f32 -1.442695, %v218_v32 }
 0x255   :  { %760 = vpow2.f32 %v710_v33  ;;  %v747_v33 = vld [vmem:[%s1327_s10 + $0x1] ss:$0 sm:$0xff] }
 0x25b   :  { %v761_v34 = vpop.eup %760 }
 0x25c   :  { %v223_v35 = vadd.f32 1.0, %v761_v34  ;;  %v357_v34 = vld [vmem:[%s1328_s11 + $0x40] sm:$0xff] }
 0x25e   :  { %762 = vrcp.f32 %v223_v35  ;;  %v235_v39 = vand.u32 2147483648, %v223_v35  ;;  %v233_v41 = vand.u32 2147483647, %v223_v35  ;;  %vm229_vm12 = vweird.f32 %v223_v35 }
 0x260   :  { %v236_v44 = vor.u32 1.1754944e-38, %v235_v39  ;;  %vm234_vm15 = vcmp.eq.f32.partialorder %v233_v41, 8.507059e+37  ;;  %v625_v39 = vld [vmem:[%s1332_s15 + $0x78] sm:$0xff] }
 0x261   :  { %630 = vmatpush.msra.mxu0 %v625_v39 }
 0x264   :  { %v763_v36 = vpop.eup %762 }
 0x265   :  { %v225_v37 = vmul.f32 %v763_v36, %v223_v35  ;;  %vm230_vm11 = vweird.f32 %v763_v36  ;;  %v492_v35 = vld [vmem:[%s1330_s13 + $0x60] sm:$0xff] }
 0x266   :  { %vm231_vm13 = vmor %vm229_vm12, %vm230_vm11  ;;  %503 = vmatpush.msrb.mxu1 %v492_v35  ;;  %v482_v35 = vld [vmem:[%s1330_s13 + $0x10] sm:$0xff] }
 0x267   :  { %v226_v38 = vsub.f32 1.0, %v225_v37  ;;  %v356_v37 = vld [vmem:[%s1328_s11 + $0x38] sm:$0xff] }
 0x269   :  { %v227_v40 = vmul.f32 %v763_v36, %v226_v38  ;;  %v491_v38 = vld [vmem:[%s1330_s13 + $0x58] sm:$0xff] }
 0x26a   :  { %504 = vmatpush.msrb.mxu1 %v491_v38 }
 0x26b   :  { %v228_v43 = vadd.f32 %v763_v36, %v227_v40 }
 0x26d   :  { %v232_v45 = vsel %vm231_vm13, %v763_v36, %v228_v43 }
 0x26e   :  { %v237_v46 = vsel %vm234_vm15, %v236_v44, %v232_v45  ;;  %v355_v44 = vld [vmem:[%s1328_s11 + $0x30] sm:$0xff]  ;;  %vm389_vm15 = vcmask 197632  }
 0x26f   :  { %240 = vst.msk [vmem:[%s1337_s20] sm:$0x3] %vm239_vm14, %v237_v46  ;;  %v490_v45 = vld [vmem:[%s1330_s13 + $0x50] sm:$0xff] }
 0x270   :  { %241 = vst.msk [vmem:[%s1338_s21] sm:$0x3] %vm239_vm14, %v237_v46  ;;  %v624_v46 = vld [vmem:[%s1332_s15 + $0x70] sm:$0xff]  ;;  %505 = vmatpush.msrb.mxu1 %v490_v45  ;;  %v481_v45 = vld [vmem:[%s1330_s13 + $0x8] sm:$0xff] }
 0x271   :  { %631 = vmatpush.msra.mxu0 %v624_v46  ;;  %v615_v46 = vld [vmem:[%s1332_s15 + $0x28] sm:$0xff] }
 0x272   :  { %506 = vmatpush.msrb.mxu1 %v489_v51 }
 0x273   :  { %632 = vmatpush.msra.mxu0 %v623_v52 }
 0x2c2   :  { %v252_v54 = vpop.xlane.xlu1 %251 }
 0x2c3   :  { %v253_v55 = vmul.f32 %v252_v54, %v970_v9  ;;  %v740_v9 = vld [vmem:[%s1324_s7] ss:$0 sm:$0xff]  ;;  %s679_s7 = sshll.u32 %s852_s18, 4  ;;  %s680_s7 = int_to_ptr.vmem [resolvable:$true] %s679_s7 }
 0x2c5   :  { %v254_v57 = vadd.f32 1e-05, %v253_v55 }
 0x2c7   :  { %764 = vrsqrt.f32 %v254_v57  ;;  %vm261_vm1 = vweird.f32 %v254_v57 }
 0x2cd   :  { %v765_v58 = vpop.eup %764 }
 0x2ce   :  { %v256_v59 = vmul.f32 %v765_v58, %v254_v57  ;;  %vm262_vm0 = vweird.f32 %v765_v58  ;;  %v353_v57 = vld [vmem:[%s1328_s11 + $0x20] sm:$0xff] }
 0x2cf   :  { %vm263_vm2 = vmor %vm261_vm1, %vm262_vm0  ;;  %vm650_vm0 = vcmask 99328  }
 0x2d0   :  { %v257_v60 = vmul.f32 %v765_v58, %v256_v59  ;;  %v622_v59 = vld [vmem:[%s1332_s15 + $0x60] sm:$0xff] }
 0x2d1   :  { %633 = vmatpush.msra.mxu0 %v622_v59 }
 0x2d2   :  { %v258_v61 = vmul.f32 0.5, %v257_v60 }
 0x2d4   :  { %v259_v62 = vsub.f32 1.5, %v258_v61 }
 0x2d6   :  { %v260_v63 = vmul.f32 %v765_v58, %v259_v62  ;;  %v352_v62 = vld [vmem:[%s1328_s11 + $0x18] sm:$0xff] }
 0x2d8   :  { %v264_v0 = vsel %vm263_vm2, %v765_v58, %v260_v63  ;;  %v488_v58 = vld [vmem:[%s1330_s13 + $0x40] sm:$0xff]  ;;  %v487_v63 = vld [vmem:[%s1330_s13 + $0x38] sm:$0xff] }
 0x2d9   :  { %v265_v1 = vmul.f32 %v264_v0, %v248_v27  ;;  %v359_v27 = vld [vmem:[%s1328_s11 + $0x50] sm:$0xff]  ;;  %507 = vmatpush.msrb.mxu1 %v488_v58  ;;  %v613_v58 = vld [vmem:[%s1332_s15 + $0x18] sm:$0xff] }
 0x2da   :  { %374 = vmatpush.msra.mxu3 %v359_v27 }
 0x2db   :  { %v269_v3 = vmul.f32 %v740_v9, %v265_v1  ;;  %v398_v8 = vmul.f32 %v742_v5, %v265_v1  ;;  %v528_v15 = vmul.f32 %v744_v14, %v265_v1  ;;  %v621_v9 = vld [vmem:[%s1332_s15 + $0x58] sm:$0xff]  ;;  %508 = vmatpush.msrb.mxu1 %v487_v63  ;;  %v350_v14 = vld [vmem:[%s1328_s11 + $0x8] sm:$0xff]  ;;  %v612_v63 = vld [vmem:[%s1332_s15 + $0x10] sm:$0xff] }
 0x2dc   :  { %375 = vmatpush.msra.mxu3 %v358_v30  ;;  %634 = vmatpush.msra.mxu0 %v621_v9 }
 0x2dd   :  { %v273_v4 = vadd.f32 %v741_v2, %v269_v3  ;;  %v402_v13 = vadd.f32 %v743_v10, %v398_v8  ;;  %v532_v17 = vadd.f32 %v745_v16, %v528_v15  ;;  %v620_v8 = vld [vmem:[%s1332_s15 + $0x50] sm:$0xff]  ;;  %v485_v15 = vld [vmem:[%s1330_s13 + $0x28] sm:$0xff] }
 0x2de   :  { %376 = vmatpush.msra.mxu3 %v357_v34  ;;  %635 = vmatpush.msra.mxu0 %v620_v8  ;;  %v619_v16 = vld [vmem:[%s1332_s15 + $0x48] sm:$0xff]  ;;  %v610_v8 = vld [vmem:[%s1332_s15] sm:$0xff] }
 0x2df   :  { %711 = vmatmul.msk.f32.vlgmr.msrb.gmra.mxu2 %vm114_vm5, %v273_v4 }
 0x2e0   :  { %558 = vmatpush.msrb.mxu2 %v727_v6  ;;  %377 = vmatpush.msra.mxu3 %v356_v37  ;;  %v351_v6 = vld [vmem:[%s1328_s11 + $0x10] sm:$0xff] }
 0x2e1   :  { %636 = vmatpush.msra.mxu0 %v619_v16  ;;  %v616_v37 = vld [vmem:[%s1332_s15 + $0x30] sm:$0xff] }
 0x2e2   :  { %559 = vmatpush.msrb.mxu2 %v726_v7  ;;  %378 = vmatpush.msra.mxu3 %v355_v44  ;;  %v486_v7 = vld [vmem:[%s1330_s13 + $0x30] sm:$0xff] }
 0x2e3   :  { %509 = vmatpush.msrb.mxu1 %v486_v7  ;;  %637 = vmatpush.msra.mxu0 %v618_v23 }
 0x2e4   :  { %560 = vmatpush.msrb.mxu2 %v725_v11  ;;  %379 = vmatpush.msra.mxu3 %v354_v50 }
 0x2e5   :  { %510 = vmatpush.msrb.mxu1 %v485_v15 }
 0x2e6   :  { %561 = vmatpush.msrb.mxu2 %v724_v12  ;;  %380 = vmatpush.msra.mxu3 %v353_v57 }
 0x2e7   :  { %720 = vmatmul.msk.f32.vlgmr.msra.gmra.mxu2 %vm114_vm5, %v402_v13  ;;  %511 = vmatpush.msrb.mxu1 %v484_v22 }
 0x2e8   :  { %381 = vmatpush.msra.mxu3 %v352_v62 }
 0x2e9   :  { %512 = vmatpush.msrb.mxu1 %v483_v31 }
 0x2ea   :  { %382 = vmatpush.msra.mxu3 %v351_v6 }
 0x2eb   :  { %513 = vmatpush.msrb.mxu1 %v482_v35 }
 0x2ec   :  { %383 = vmatpush.msra.mxu3 %v350_v14 }
 0x2ed   :  { %514 = vmatpush.msrb.mxu1 %v481_v45 }
 0x2ef   :  { %729 = vmatmul.msk.f32.vlgmr.msrb.gmra.mxu2 %vm114_vm5, %v532_v17 }
 0x362   :  { %v302_v25 = vpop.f32.mrf.mxu2 }
 0x363   :  { %v1101_v26 = vadd.f32 %v746_v21, %v302_v25  ;;  %v349_v21 = vld [vmem:[%s1328_s11] sm:$0xff] }
 0x364   :  { %384 = vmatpush.msra.mxu3 %v349_v21 }
 0x365   :  { %v1111_v29 = vmul.f32 %v1101_v26, %v997_v42 }
 0x367   :  { %v307_v32 = vmul.f32 %v1111_v29, %v1111_v29 }
 0x369   :  { %v1130_v36 = vmin.f32 %v307_v32, 16.0  ;;  %v617_v32 = vld [vmem:[%s1332_s15 + $0x38] sm:$0xff] }
 0x36a   :  { %v433_v40 = vpop.f32.mrf.mxu2  ;;  %638 = vmatpush.msra.mxu0 %v617_v32 }
 0x36b   :  { %v309_v41 = vmul.f32 2.1237322e-06, %v1130_v36  ;;  %v1142_v43 = vadd.f32 %v747_v33, %v433_v40  ;;  %v320_v47 = vmul.f32 3.8918573e-05, %v1130_v36 }
 0x36c   :  { %639 = vmatpush.msra.mxu0 %v616_v37 }
 0x36d   :  { %v310_v48 = vadd.f32 0.00028619796, %v309_v41  ;;  %v1156_v49 = vmul.f32 %v1142_v43, %v997_v42  ;;  %v321_v54 = vadd.f32 0.001143296, %v320_v47 }
 0x36e   :  { %640 = vmatpush.msra.mxu0 %v615_v46 }
 0x36f   :  { %v311_v55 = vmul.f32 %v310_v48, %v1130_v36  ;;  %v438_v56 = vmul.f32 %v1156_v49, %v1156_v49  ;;  %v322_v60 = vmul.f32 %v321_v54, %v1130_v36  ;;  %v614_v54 = vld [vmem:[%s1332_s15 + $0x20] sm:$0xff] }
 0x370   :  { %641 = vmatpush.msra.mxu0 %v614_v54 }
 0x371   :  { %v1183_v61 = vmin.f32 %v438_v56, 16.0  ;;  %v312_v0 = vadd.f32 0.0036580483, %v311_v55  ;;  %v323_v2 = vadd.f32 0.014752088, %v322_v60 }
 0x372   :  { %v563_v1 = vpop.f32.mrf.mxu2  ;;  %642 = vmatpush.msra.mxu0 %v613_v58  ;;  %v436_v58 = vmul.f32 0.5, %v1142_v43 }
 0x373   :  { %v440_v3 = vmul.f32 2.1237322e-06, %v1183_v61  ;;  %v451_v4 = vmul.f32 3.8918573e-05, %v1183_v61  ;;  %v1196_v5 = vadd.f32 %v748_v53, %v563_v1  ;;  %v324_v10 = vmul.f32 %v323_v2, %v1130_v36  ;;  %v480_v53 = vld [vmem:[%s1330_s13] sm:$0xff] }
 0x374   :  { %v313_v18 = vmul.f32 %v312_v0, %v1130_v36  ;;  %515 = vmatpush.msrb.mxu1 %v480_v53  ;;  %643 = vmatpush.msra.mxu0 %v612_v63 }
 0x375   :  { %v441_v11 = vadd.f32 0.00028619796, %v440_v3  ;;  %v452_v12 = vadd.f32 0.001143296, %v451_v4  ;;  %v1210_v13 = vmul.f32 %v1196_v5, %v997_v42  ;;  %v325_v17 = vadd.f32 0.112945676, %v324_v10 }
 0x376   :  { %v314_v33 = vadd.f32 0.05243302, %v313_v18  ;;  %v611_v3 = vld [vmem:[%s1332_s15 + $0x8] sm:$0xff] }
 0x377   :  { %v442_v19 = vmul.f32 %v441_v11, %v1183_v61  ;;  %v453_v42 = vmul.f32 %v452_v12, %v1183_v61  ;;  %v568_v20 = vmul.f32 %v1210_v13, %v1210_v13  ;;  %v326_v24 = vmul.f32 %v325_v17, %v1130_v36  ;;  %644 = vmatpush.msra.mxu0 %v611_v3 }
 0x378   :  { %v315_v51 = vmul.f32 %v314_v33, %v1130_v36 }
 0x379   :  { %v443_v25 = vadd.f32 0.0036580483, %v442_v19  ;;  %v454_v27 = vadd.f32 0.014752088, %v453_v42  ;;  %v1236_v28 = vmin.f32 %v568_v20, 16.0  ;;  %645 = vmatpush.msra.mxu0 %v610_v8 }
 0x37a   :  { %v327_v30 = vadd.f32 0.4994258, %v326_v24  ;;  %v316_v60 = vadd.f32 0.18741608, %v315_v51 }
 0x37b   :  { %v455_v34 = vmul.f32 %v454_v27, %v1183_v61  ;;  %v444_v38 = vmul.f32 %v443_v25, %v1183_v61  ;;  %v570_v39 = vmul.f32 2.1237322e-06, %v1236_v28  ;;  %v581_v41 = vmul.f32 3.8918573e-05, %v1236_v28 }
 0x37c   :  { %v328_v40 = vmul.f32 %v327_v30, %v1130_v36  ;;  %v317_v7 = vmul.f32 %v316_v60, %v1130_v36 }
 0x37d   :  { %v456_v44 = vadd.f32 0.112945676, %v455_v34  ;;  %v571_v47 = vadd.f32 0.00028619796, %v570_v39  ;;  %v582_v50 = vadd.f32 0.001143296, %v581_v41 }
 0x37e   :  { %v329_v48 = vadd.f32 1.0, %v328_v40  ;;  %v445_v55 = vadd.f32 0.05243302, %v444_v38  ;;  %v318_v16 = vadd.f32 1.1283791, %v317_v7 }
 0x37f   :  { %v457_v52 = vmul.f32 %v456_v44, %v1183_v61  ;;  %v572_v57 = vmul.f32 %v571_v47, %v1236_v28  ;;  %v583_v59 = vmul.f32 %v582_v50, %v1236_v28  ;;  %v305_v44 = vmul.f32 0.5, %v1101_v26 }
 0x380   :  { %766 = vrcp.f32 %v329_v48  ;;  %v446_v0 = vmul.f32 %v445_v55, %v1183_v61  ;;  %v341_v17 = vand.u32 2147483648, %v329_v48  ;;  %v339_v42 = vand.u32 2147483647, %v329_v48 }
 0x381   :  { %v458_v56 = vadd.f32 0.4994258, %v457_v52  ;;  %v584_v9 = vadd.f32 0.014752088, %v583_v59  ;;  %v573_v2 = vadd.f32 0.0036580483, %v572_v57  ;;  %vm335_vm4 = vweird.f32 %v329_v48 }
 0x382   :  { %v447_v10 = vadd.f32 0.18741608, %v446_v0  ;;  %v319_v25 = vmul.f32 %v318_v16, %v1111_v29  ;;  %v342_v27 = vor.u32 1.1754944e-38, %v341_v17  ;;  %vm340_vm6 = vcmp.eq.f32.partialorder %v339_v42, 8.507059e+37 }
 0x383   :  { %v459_v62 = vmul.f32 %v458_v56, %v1183_v61  ;;  %v585_v4 = vmul.f32 %v584_v9, %v1236_v28  ;;  %v574_v12 = vmul.f32 %v573_v2, %v1236_v28 }
 0x384   :  { %v448_v19 = vmul.f32 %v447_v10, %v1183_v61  ;;  %v749_v10 = vld [vmem:[%s1329_s12] ss:$0 sm:$0xff] }
 0x385   :  { %v460_v1 = vadd.f32 1.0, %v459_v62  ;;  %v586_v14 = vadd.f32 0.112945676, %v585_v4  ;;  %v575_v21 = vadd.f32 0.05243302, %v574_v12 }
 0x386   :  { %v767_v6 = vpop.eup %766  ;;  %v449_v31 = vadd.f32 1.1283791, %v448_v19 }
 0x387   :  { %768 = vrcp.f32 %v460_v1  ;;  %v331_v11 = vmul.f32 %v767_v6, %v329_v48  ;;  %v587_v18 = vmul.f32 %v586_v14, %v1236_v28  ;;  %vm336_vm3 = vweird.f32 %v767_v6 }
 0x388   :  { %vm337_vm5 = vmor %vm335_vm4, %vm336_vm3  ;;  %v472_v61 = vand.u32 2147483648, %v460_v1  ;;  %v576_v34 = vmul.f32 %v575_v21, %v1236_v28  ;;  %v470_v39 = vand.u32 2147483647, %v460_v1  ;;  %vm466_vm8 = vweird.f32 %v460_v1 }
 0x389   :  { %v332_v15 = vsub.f32 1.0, %v331_v11  ;;  %v588_v22 = vadd.f32 0.4994258, %v587_v18  ;;  %v450_v47 = vmul.f32 %v449_v31, %v1156_v49  ;;  %v750_v11 = vld [vmem:[%s1331_s14] ss:$0 sm:$0xff] }
 0x38a   :  { %v473_v45 = vor.u32 1.1754944e-38, %v472_v61  ;;  %v577_v46 = vadd.f32 0.18741608, %v576_v34  ;;  %vm471_vm10 = vcmp.eq.f32.partialorder %v470_v39, 8.507059e+37 }
 0x38b   :  { %v333_v36 = vmul.f32 %v767_v6, %v332_v15  ;;  %v589_v30 = vmul.f32 %v588_v22, %v1236_v28  ;;  %v751_v15 = vld [vmem:[%s1333_s16] ss:$0 sm:$0xff] }
 0x38c   :  { %v578_v55 = vmul.f32 %v577_v46, %v1236_v28 }
 0x38d   :  { %v769_v20 = vpop.eup %768  ;;  %v334_v24 = vadd.f32 %v767_v6, %v333_v36  ;;  %v590_v37 = vadd.f32 1.0, %v589_v30 }
 0x38e   :  { %v462_v23 = vmul.f32 %v769_v20, %v460_v1  ;;  %vm467_vm7 = vweird.f32 %v769_v20  ;;  %v579_v60 = vadd.f32 1.1283791, %v578_v55 }
 0x38f   :  { %v338_v33 = vsel %vm337_vm5, %v767_v6, %v334_v24  ;;  %770 = vrcp.f32 %v590_v37  ;;  %vm468_vm9 = vmor %vm466_vm8, %vm467_vm7  ;;  %v602_v62 = vand.u32 2147483648, %v590_v37  ;;  %v600_v9 = vand.u32 2147483647, %v590_v37 }
 0x390   :  { %v463_v32 = vsub.f32 1.0, %v462_v23  ;;  %v343_v35 = vsel %vm340_vm6, %v342_v27, %v338_v33  ;;  %vm596_vm12 = vweird.f32 %v590_v37  ;;  %v580_v28 = vmul.f32 %v579_v60, %v1210_v13 }
 0x391   :  { %v344_v40 = vmul.f32 %v343_v35, %v319_v25  ;;  %v603_v1 = vor.u32 1.1754944e-38, %v602_v62  ;;  %vm601_vm14 = vcmp.eq.f32.partialorder %v600_v9, 8.507059e+37  ;;  %v566_v6 = vmul.f32 0.5, %v1196_v5 }
 0x392   :  { %v464_v38 = vmul.f32 %v769_v20, %v463_v32 }
 0x393   :  { %v712_v29 = vclamps-f32 %v344_v40, 1.0 }
 0x394   :  { %v465_v41 = vadd.f32 %v769_v20, %v464_v38 }
 0x395   :  { %v347_v50 = vadd.f32 1.0, %v712_v29  ;;  %v771_v54 = vpop.eup %770 }
 0x396   :  { %v469_v48 = vsel %vm468_vm9, %v769_v20, %v465_v41  ;;  %v592_v57 = vmul.f32 %v771_v54, %v590_v37  ;;  %vm597_vm11 = vweird.f32 %v771_v54 }
 0x397   :  { %v474_v51 = vsel %vm471_vm10, %v473_v45, %v469_v48  ;;  %v348_v53 = vmul.f32 %v347_v50, %v305_v44  ;;  %vm598_vm13 = vmor %vm596_vm12, %vm597_vm11 }
 0x398   :  { %v475_v52 = vmul.f32 %v474_v51, %v450_v47  ;;  %v593_v59 = vsub.f32 1.0, %v592_v57 }
 0x399   :  { %385 = vmatmul.f32.vlgmr.msra.gmra.mxu3 %v348_v53 }
 0x39a   :  { %v721_v56 = vclamps-f32 %v475_v52, 1.0  ;;  %v594_v49 = vmul.f32 %v771_v54, %v593_v59 }
 0x39c   :  { %v478_v26 = vadd.f32 1.0, %v721_v56  ;;  %v595_v0 = vadd.f32 %v771_v54, %v594_v49 }
 0x39e   :  { %v479_v63 = vmul.f32 %v478_v26, %v436_v58  ;;  %v599_v2 = vsel %vm598_vm13, %v771_v54, %v595_v0 }
 0x39f   :  { %v604_v3 = vsel %vm601_vm14, %v603_v1, %v599_v2 }
 0x3a0   :  { %516 = vmatmul.f32.vlgmr.msrb.gmra.mxu1 %v479_v63  ;;  %v605_v4 = vmul.f32 %v604_v3, %v580_v28 }
 0x3a2   :  { %v730_v43 = vclamps-f32 %v605_v4, 1.0 }
 0x3a4   :  { %v608_v7 = vadd.f32 1.0, %v730_v43 }
 0x3a6   :  { %v609_v8 = vmul.f32 %v608_v7, %v566_v6 }
 0x3a8   :  { %646 = vmatmul.f32.vlgmr.msra.gmra.mxu0 %v609_v8 }
 0x41c   :  { %v386_v5 = vpop.f32.mrf.mxu3 }
 0x41d   :  { %v517_v13 = vpop.f32.mrf.mxu1  ;;  %v387_v12 = vadd.f32 %v749_v10, %v386_v5 }
 0x41e   :  { %v518_v14 = vadd.f32 %v750_v11, %v517_v13 }
 0x41f   :  { %390 = vst.msk [vmem:[#allocation3] sm:$0x3] %vm389_vm15, %v387_v12 }
 0x420   :  { %520 = vst.msk [vmem:[#allocation5] sm:$0x3] %vm389_vm15, %v518_v14  ;;  %662 = dma.vmem_to_hbm [thread:$0]  %s658_s3, 32, %s660_s28, [#allocation4]  }
 0x421   :  { %673 = dma.vmem_to_hbm [thread:$0]  %s669_s24, 32, %s671_s26, [#allocation6]  }
 0x425   :  { %v647_v16 = vpop.f32.mrf.mxu0 }
 0x426   :  { %v648_v17 = vadd.f32 %v751_v15, %v647_v16 }
 0x428   :  { %651 = vst.msk [vmem:[#allocation7] sm:$0x3] %vm650_vm0, %v648_v17 }
 0x429   :  { %684 = dma.vmem_to_hbm [thread:$0]  %s680_s7, 32, %s682_s0, [#allocation6]  }
 0x42a   :  { %844 = dma.done.wait [#allocation4], 32  }
 0x42b   :  { %845 = vsyncadd [#allocation4], 4294967264 }
 0x42c   :  { %846 = dma.done.wait [#allocation6], 64  }
 0x42d   :  { %847 = vsyncadd [#allocation6], 4294967232 }
 0x42e   :  { %705 = vsyncpa [#allocation4], 1 }
 0x42f   :  { %706 = vsyncpa [#allocation6], 1 }

</bundles_post_ra>
